<compile_context>
chip_gen: v6e
topology: v6e:2x2x1
jax: 0.10.0
libtpu: 0.0.40
codegen_flags: <defaults>
</compile_context>

<pallas_src>
import jax
import jax.numpy as jnp
from jax import lax
from jax.experimental import pallas as pl
from jax.experimental.pallas import tpu as pltpu


NEG_BIG = -1e30  # padding logit: exp(NEG_BIG - m) underflows to exactly 0.0 in f32


def prediction_kernel(x_ref,            # (TB, C*HW)       f32
                      wconv_ref,        # (C*HW, 2*F)      fused policy+value 1x1 conv
                      bconv_ref,        # (1, 2*F)
                      w1_ref, b1_ref,   # (F, F), (1, F)   zero-padded (in, out) layout
                      w2_ref, b2_ref,   # (F, A_PAD), (1, A_PAD)  pad: w=0, b=-1e30
                      wv_ref, bv_ref,   # (1, F), (1, 1)
                      out_ref):         # (TB, A_PAD) out: policy in [0:A), tanh(v) in lane A_PAD-1
    F = wv_ref.shape[1]
    A_PAD = out_ref.shape[1]
    x = x_ref[...]

    # Fused 1x1 convs for both heads as one MXU matmul + ReLU.  Columns [0:F) are the
    # (zero-padded) policy features, [F:2F) the value features, in torch Flatten order.
    feat = jnp.dot(x, wconv_ref[...], preferred_element_type=jnp.float32) + bconv_ref[...]
    feat = jnp.maximum(feat, 0.0)
    feat_p = feat[:, :F]          # 128-aligned slices -> zero-cost views
    feat_v = feat[:, F:]

    # ---- policy head: Linear -> ReLU -> Linear -> stable softmax ----
    h = jnp.dot(feat_p, w1_ref[...], preferred_element_type=jnp.float32) + b1_ref[...]
    h = jnp.maximum(h, 0.0)
    logits = jnp.dot(h, w2_ref[...], preferred_element_type=jnp.float32) + b2_ref[...]
    # Padded columns (incl. the value lane) carry logit -1e30 -> exp underflows to 0,
    # so the lane-dense softmax is exact over the real A columns.
    m = jnp.max(logits, axis=-1, keepdims=True)
    e = jnp.exp(logits - m)
    s = jnp.sum(e, axis=-1, keepdims=True)
    policy = e * pl.reciprocal(s, approx=False)     # divide on EUP, not VPU

    # ---- value head: N=1 linear on VPU (mul) + lane reduce, skip the MXU ----
    v = jnp.sum(feat_v * wv_ref[...], axis=-1, keepdims=True) + bv_ref[...]
    value = jnp.tanh(v)

    # Single lane-dense output store: policy everywhere, tanh(value) in the last padded lane.
    lane = lax.broadcasted_iota(jnp.int32, (policy.shape[0], A_PAD), 1)
    out_ref[...] = jnp.where(lane == (A_PAD - 1), value, policy)


def init_params(key, board_gridsize, board_size, action_space_size):
    """Deterministic parameter init with PyTorch-equivalent shapes/layout."""
    C = board_gridsize
    D = board_size * 2
    A = action_space_size
    ks = jax.random.split(key, 10)
    s = 0.1
    return {
        # policy head
        "conv_p_w": jax.random.normal(ks[0], (2, C, 1, 1), jnp.float32) * s,  # Conv2d (out,in,1,1)
        "conv_p_b": jax.random.normal(ks[1], (2,), jnp.float32) * s,
        "lin1_w":   jax.random.normal(ks[2], (D, D), jnp.float32) * s,        # (out, in)
        "lin1_b":   jax.random.normal(ks[3], (D,), jnp.float32) * s,
        "lin2_w":   jax.random.normal(ks[4], (A, D), jnp.float32) * s,
        "lin2_b":   jax.random.normal(ks[5], (A,), jnp.float32) * s,
        # value head
        "conv_v_w": jax.random.normal(ks[6], (2, C, 1, 1), jnp.float32) * s,
        "conv_v_b": jax.random.normal(ks[7], (2,), jnp.float32) * s,
        "lin_v_w":  jax.random.normal(ks[8], (1, D), jnp.float32) * s,
        "lin_v_b":  jax.random.normal(ks[9], (1,), jnp.float32) * s,
    }


def prepare_params(params, H, W):
    """One-time conversion of PyTorch-layout params into kernel layout (out of hot path)."""
    C = params["conv_p_w"].shape[1]
    HW = H * W
    D = params["lin1_w"].shape[1]
    A = params["lin2_w"].shape[0]
    F = 128 * pl.cdiv(D, 128)            # lane-aligned feature width per head
    A_PAD = 128 * pl.cdiv(A + 1, 128)    # +1 guarantees a spare lane for the value stash
    assert 2 * HW == D, "Flatten output must equal d_board_size (2 * H * W == 2 * board_size)"

    eye = jnp.eye(HW, dtype=jnp.float32)
    wp = params["conv_p_w"].reshape(2, C).astype(jnp.float32)
    wv = params["conv_v_w"].reshape(2, C).astype(jnp.float32)
    # Block-structured conv weight so (x_flat @ wconv)[:, o*HW + hw] is the 1x1-conv output
    # of channel o at spatial position hw.  Policy features occupy lanes [0:D) (rest of
    # [0:F) is zero), value features occupy lanes [F:F+D).
    wconv = jnp.zeros((C * HW, 2 * F), jnp.float32)
    wconv = wconv.at[:, :D].set(jnp.kron(wp.T, eye))
    wconv = wconv.at[:, F:F + D].set(jnp.kron(wv.T, eye))
    bconv = jnp.zeros((1, 2 * F), jnp.float32)
    bconv = bconv.at[0, :D].set(jnp.repeat(params["conv_p_b"].astype(jnp.float32), HW))
    bconv = bconv.at[0, F:F + D].set(jnp.repeat(params["conv_v_b"].astype(jnp.float32), HW))

    # Zero-padded (in, out) linears over the F-wide feature space; padded rows/cols are 0
    # so the math is identical to the unpadded module.
    w1 = jnp.zeros((F, F), jnp.float32).at[:D, :D].set(params["lin1_w"].T)
    b1 = jnp.zeros((1, F), jnp.float32).at[0, :D].set(params["lin1_b"])
    w2 = jnp.zeros((F, A_PAD), jnp.float32).at[:D, :A].set(params["lin2_w"].T)
    b2 = jnp.full((1, A_PAD), NEG_BIG, jnp.float32).at[0, :A].set(params["lin2_b"])
    wvrow = jnp.zeros((1, F), jnp.float32).at[0, :D].set(params["lin_v_w"].reshape(D))
    bv = params["lin_v_b"].reshape(1, 1).astype(jnp.float32)

    return {"wconv": wconv, "bconv": bconv, "w1": w1, "b1": b1,
            "w2": w2, "b2": b2, "wv": wvrow, "bv": bv,
            "A": A, "HW": HW, "D": D, "F": F, "A_PAD": A_PAD}


def prediction_forward(prepared, hidden_state, *, block_batch=None, max_block_batch=2048):
    """hidden_state: NCHW (B, C, H, W); returns (policy (B, A), value (B, 1)).

    block_batch is the primary tunable:
      - v5e/v6e (single TC): leave None -> one maximal tile (grid of 1 when B <= cap).
      - v7x (2 TCs): pass block_batch ~= round_up(ceil(B/2), 8) for B > ~1k so the
        "parallel" batch grid has >= 2 steps to shard across both TensorCores.
    """
    B, C, H, W = hidden_state.shape
    HW = H * W
    CHW = C * HW
    D = prepared["D"]
    A = prepared["A"]
    A_PAD = prepared["A_PAD"]
    assert HW == prepared["HW"] and 2 * HW == D

    x = hidden_state.reshape(B, CHW).astype(jnp.float32)   # free reshape, channel-major rows

    if block_batch is None:
        TB = B if B <= max_block_batch else max_block_batch
    else:
        TB = block_batch
    assert TB == B or TB % 8 == 0, "batch tile must equal B or be a multiple of 8"

    grid = (pl.cdiv(B, TB),)

    def batch_map(i):
        return (i, 0)

    def const_map(i):
        return (0, 0)                         # weights: single block, stays resident

    def wspec(arr):
        return pl.BlockSpec(arr.shape, const_map)

    out = pl.pallas_call(
        prediction_kernel,
        out_shape=jax.ShapeDtypeStruct((B, A_PAD), jnp.float32),
        grid=grid,
        in_specs=[
            pl.BlockSpec((TB, CHW), batch_map),
            wspec(prepared["wconv"]), wspec(prepared["bconv"]),
            wspec(prepared["w1"]), wspec(prepared["b1"]),
            wspec(prepared["w2"]), wspec(prepared["b2"]),
            wspec(prepared["wv"]), wspec(prepared["bv"]),
        ],
        out_specs=pl.BlockSpec((TB, A_PAD), batch_map),
        compiler_params=pltpu.CompilerParams(
            dimension_semantics=("parallel",),          # shard batch grid across TCs (v7x)
            vmem_limit_bytes=32 * 1024 * 1024,
        ),
    )(x, prepared["wconv"], prepared["bconv"], prepared["w1"], prepared["b1"],
      prepared["w2"], prepared["b2"], prepared["wv"], prepared["bv"])

    policy = out[:, :A]
    value = out[:, A_PAD - 1:A_PAD]            # tanh(v) stashed in the last padded lane
    return policy, value


def prediction_reference(params, hidden_state):
    """Pure-JAX reference mirroring the PyTorch forward (for sanity check)."""
    B, C, H, W = hidden_state.shape
    x = hidden_state.astype(jnp.float32)

    def head(conv_w, conv_b):
        y = jnp.einsum("bchw,oc->bohw", x, conv_w.reshape(2, C)) + conv_b[None, :, None, None]
        y = jnp.maximum(y, 0.0)
        return y.reshape(B, -1)                # torch Flatten order (channel-major)

    fp = head(params["conv_p_w"], params["conv_p_b"])
    h = jnp.maximum(fp @ params["lin1_w"].T + params["lin1_b"], 0.0)
    logits = h @ params["lin2_w"].T + params["lin2_b"]
    policy = jax.nn.softmax(logits, axis=1)

    fv = head(params["conv_v_w"], params["conv_v_b"])
    value = jnp.tanh(fv @ params["lin_v_w"].T + params["lin_v_b"])
    return policy, value


if __name__ == "__main__":
    # Small shapes consistent with the module: H*W must equal board_size.
    board_gridsize = 4          # conv in_channels
    H = W = 4
    board_size = H * W          # 16 -> d_board_size = 32
    action_space_size = 16

    key = jax.random.PRNGKey(0)
    pkey, xkey1, xkey2 = jax.random.split(key, 3)
    params = init_params(pkey, board_gridsize, board_size, action_space_size)
    prepared = prepare_params(params, H, W)     # one-time weight repack (out of hot path)

    # Case 1: tiny batch, single grid step.
    B1 = 2
    hs1 = jax.random.normal(xkey1, (B1, board_gridsize, H, W), jnp.float32)
    p1, v1 = jax.block_until_ready(prediction_forward(prepared, hs1))
    rp1, rv1 = prediction_reference(params, hs1)
    assert p1.shape == (B1, action_space_size) and v1.shape == (B1, 1)
    assert jnp.allclose(p1, rp1, atol=1e-5, rtol=1e-5)
    assert jnp.allclose(v1, rv1, atol=1e-5, rtol=1e-5)
    assert jnp.allclose(jnp.sum(p1, axis=1), 1.0, atol=1e-5)

    # Case 2: multi-step batch grid (exercises tiling + resident weight blocks).
    B2 = 16
    hs2 = jax.random.normal(xkey2, (B2, board_gridsize, H, W), jnp.float32)
    p2, v2 = jax.block_until_ready(prediction_forward(prepared, hs2, block_batch=8))
    rp2, rv2 = prediction_reference(params, hs2)
    assert p2.shape == (B2, action_space_size) and v2.shape == (B2, 1)
    assert jnp.allclose(p2, rp2, atol=1e-5, rtol=1e-5)
    assert jnp.allclose(v2, rv2, atol=1e-5, rtol=1e-5)

    print("KERNEL_OK")
</pallas_src>

<mosaic_0001>
module attributes {stable_mosaic.version = 11 : i64} {
  func.func @prediction_kernel(%arg0: i32, %arg1: memref<2x64xf32, #tpu.memory_space<vmem>>, %arg2: memref<64x256xf32, #tpu.memory_space<vmem>>, %arg3: memref<1x256xf32, #tpu.memory_space<vmem>>, %arg4: memref<128x128xf32, #tpu.memory_space<vmem>>, %arg5: memref<1x128xf32, #tpu.memory_space<vmem>>, %arg6: memref<128x128xf32, #tpu.memory_space<vmem>>, %arg7: memref<1x128xf32, #tpu.memory_space<vmem>>, %arg8: memref<1x128xf32, #tpu.memory_space<vmem>>, %arg9: memref<1x1xf32, #tpu.memory_space<vmem>>, %arg10: memref<2x128xf32, #tpu.memory_space<vmem>>) attributes {dimension_semantics = [#tpu.dimension_semantics<parallel>], iteration_bounds = array<i64: 1>, scalar_prefetch = 0 : i64, scratch_operands = 0 : i64, tpu.core_type = #tpu.core_type<tc>, window_params = [{transform_indices = @transform_0, window_bounds = array<i64: 2, 64>}, {pipeline_mode = #tpu.pipeline_mode<synchronous>, transform_indices = @transform_1, window_bounds = array<i64: 64, 256>}, {pipeline_mode = #tpu.pipeline_mode<synchronous>, transform_indices = @transform_2, window_bounds = array<i64: 1, 256>}, {pipeline_mode = #tpu.pipeline_mode<synchronous>, transform_indices = @transform_3, window_bounds = array<i64: 128, 128>}, {pipeline_mode = #tpu.pipeline_mode<synchronous>, transform_indices = @transform_4, window_bounds = array<i64: 1, 128>}, {pipeline_mode = #tpu.pipeline_mode<synchronous>, transform_indices = @transform_5, window_bounds = array<i64: 128, 128>}, {pipeline_mode = #tpu.pipeline_mode<synchronous>, transform_indices = @transform_6, window_bounds = array<i64: 1, 128>}, {pipeline_mode = #tpu.pipeline_mode<synchronous>, transform_indices = @transform_7, window_bounds = array<i64: 1, 128>}, {pipeline_mode = #tpu.pipeline_mode<synchronous>, transform_indices = @transform_8, window_bounds = array<i64: 1, 1>}, {transform_indices = @transform_9, window_bounds = array<i64: 2, 128>}]} {
    %c0 = arith.constant 0 : index
    %c0_0 = arith.constant 0 : index
    %0 = vector.load %arg1[%c0, %c0_0] : memref<2x64xf32, #tpu.memory_space<vmem>>, vector<2x64xf32>
    %c0_1 = arith.constant 0 : index
    %c0_2 = arith.constant 0 : index
    %1 = vector.load %arg2[%c0_1, %c0_2] : memref<64x256xf32, #tpu.memory_space<vmem>>, vector<64x256xf32>
    %cst = arith.constant dense<0.000000e+00> : vector<2x256xf32>
    %2 = tpu.matmul %0, %1, %cst {dimension_numbers = #tpu.dot_dimension_numbers<[1], [0], [0], [1], [0, 0, 1, 1], [], []>} : vector<2x64xf32>, vector<64x256xf32>, vector<2x256xf32> -> vector<2x256xf32>
    %c0_3 = arith.constant 0 : index
    %c0_4 = arith.constant 0 : index
    %3 = vector.load %arg3[%c0_3, %c0_4] : memref<1x256xf32, #tpu.memory_space<vmem>>, vector<1x256xf32>
    %4 = vector.broadcast %3 : vector<1x256xf32> to vector<2x256xf32>
    %5 = arith.addf %2, %4 : vector<2x256xf32>
    %cst_5 = arith.constant 0.000000e+00 : f32
    %6 = vector.broadcast %cst_5 : f32 to vector<2x256xf32>
    %7 = arith.maximumf %5, %6 : vector<2x256xf32>
    %8 = vector.extract_strided_slice %7 {offsets = [0, 0], sizes = [2, 128], strides = [1, 1]} : vector<2x256xf32> to vector<2x128xf32>
    %9 = vector.extract_strided_slice %7 {offsets = [0, 128], sizes = [2, 128], strides = [1, 1]} : vector<2x256xf32> to vector<2x128xf32>
    %c0_6 = arith.constant 0 : index
    %c0_7 = arith.constant 0 : index
    %10 = vector.load %arg4[%c0_6, %c0_7] : memref<128x128xf32, #tpu.memory_space<vmem>>, vector<128x128xf32>
    %cst_8 = arith.constant dense<0.000000e+00> : vector<2x128xf32>
    %11 = tpu.matmul %8, %10, %cst_8 {dimension_numbers = #tpu.dot_dimension_numbers<[1], [0], [0], [1], [0, 0, 1, 1], [], []>} : vector<2x128xf32>, vector<128x128xf32>, vector<2x128xf32> -> vector<2x128xf32>
    %c0_9 = arith.constant 0 : index
    %c0_10 = arith.constant 0 : index
    %12 = vector.load %arg5[%c0_9, %c0_10] : memref<1x128xf32, #tpu.memory_space<vmem>>, vector<1x128xf32>
    %13 = vector.broadcast %12 : vector<1x128xf32> to vector<2x128xf32>
    %14 = arith.addf %11, %13 : vector<2x128xf32>
    %cst_11 = arith.constant 0.000000e+00 : f32
    %15 = vector.broadcast %cst_11 : f32 to vector<2x128xf32>
    %16 = arith.maximumf %14, %15 : vector<2x128xf32>
    %c0_12 = arith.constant 0 : index
    %c0_13 = arith.constant 0 : index
    %17 = vector.load %arg6[%c0_12, %c0_13] : memref<128x128xf32, #tpu.memory_space<vmem>>, vector<128x128xf32>
    %cst_14 = arith.constant dense<0.000000e+00> : vector<2x128xf32>
    %18 = tpu.matmul %16, %17, %cst_14 {dimension_numbers = #tpu.dot_dimension_numbers<[1], [0], [0], [1], [0, 0, 1, 1], [], []>} : vector<2x128xf32>, vector<128x128xf32>, vector<2x128xf32> -> vector<2x128xf32>
    %c0_15 = arith.constant 0 : index
    %c0_16 = arith.constant 0 : index
    %19 = vector.load %arg7[%c0_15, %c0_16] : memref<1x128xf32, #tpu.memory_space<vmem>>, vector<1x128xf32>
    %20 = vector.broadcast %19 : vector<1x128xf32> to vector<2x128xf32>
    %21 = arith.addf %18, %20 : vector<2x128xf32>
    %cst_17 = arith.constant dense<0xFF800000> : vector<2xf32>
    %22 = vector.multi_reduction <maximumf>, %21, %cst_17 [1] : vector<2x128xf32> to vector<2xf32>
    %23 = vector.shape_cast %22 : vector<2xf32> to vector<2x1xf32>
    %24 = vector.broadcast %23 : vector<2x1xf32> to vector<2x128xf32>
    %25 = arith.subf %21, %24 : vector<2x128xf32>
    %26 = math.exp %25 : vector<2x128xf32>
    %cst_18 = arith.constant dense<0.000000e+00> : vector<2xf32>
    %27 = vector.multi_reduction <add>, %26, %cst_18 [1] : vector<2x128xf32> to vector<2xf32>
    %28 = vector.shape_cast %27 : vector<2xf32> to vector<2x1xf32>
    %29 = tpu.reciprocal %28 : vector<2x1xf32> -> vector<2x1xf32>
    %30 = vector.broadcast %29 : vector<2x1xf32> to vector<2x128xf32>
    %31 = arith.mulf %26, %30 : vector<2x128xf32>
    %c0_19 = arith.constant 0 : index
    %c0_20 = arith.constant 0 : index
    %32 = vector.load %arg8[%c0_19, %c0_20] : memref<1x128xf32, #tpu.memory_space<vmem>>, vector<1x128xf32>
    %33 = vector.broadcast %32 : vector<1x128xf32> to vector<2x128xf32>
    %34 = arith.mulf %9, %33 : vector<2x128xf32>
    %cst_21 = arith.constant dense<0.000000e+00> : vector<2xf32>
    %35 = vector.multi_reduction <add>, %34, %cst_21 [1] : vector<2x128xf32> to vector<2xf32>
    %36 = vector.shape_cast %35 : vector<2xf32> to vector<2x1xf32>
    %c0_22 = arith.constant 0 : index
    %c0_23 = arith.constant 0 : index
    %37 = vector.load %arg9[%c0_22, %c0_23] : memref<1x1xf32, #tpu.memory_space<vmem>>, vector<1x1xf32>
    %38 = vector.broadcast %37 : vector<1x1xf32> to vector<2x1xf32>
    %39 = arith.addf %36, %38 : vector<2x1xf32>
    %40 = math.tanh %39 : vector<2x1xf32>
    %41 = tpu.iota {dimensions = array<i32: 1>} : vector<2x128xi32>
    %c127_i32 = arith.constant 127 : i32
    %42 = vector.broadcast %c127_i32 : i32 to vector<2x128xi32>
    %43 = arith.cmpi eq, %41, %42 : vector<2x128xi32>
    %44 = vector.shape_cast %40 : vector<2x1xf32> to vector<2x1xf32>
    %45 = vector.broadcast %44 : vector<2x1xf32> to vector<2x128xf32>
    %46 = arith.select %43, %45, %31 : vector<2x128xi1>, vector<2x128xf32>
    %c0_24 = arith.constant 0 : index
    %c0_25 = arith.constant 0 : index
    %47 = vector.load %arg10[%c0_24, %c0_25] : memref<2x128xf32, #tpu.memory_space<vmem>>, vector<2x128xf32>
    tpu.vector_store %arg10[%c0_24, %c0_25], %46 {strides = array<i32>} : memref<2x128xf32, #tpu.memory_space<vmem>>, vector<2x128xf32>,
    return
  }
  func.func @transform_0(%arg0: i32) -> (i32, i32) {
    %c0_i32 = arith.constant 0 : i32
    %c0_i32_0 = arith.constant 0 : i32
    return %arg0, %c0_i32 : i32, i32
  }
  func.func @transform_1(%arg0: i32) -> (i32, i32) {
    %c0_i32 = arith.constant 0 : i32
    %c0_i32_0 = arith.constant 0 : i32
    %c0_i32_1 = arith.constant 0 : i32
    return %c0_i32, %c0_i32_0 : i32, i32
  }
  func.func @transform_2(%arg0: i32) -> (i32, i32) {
    %c0_i32 = arith.constant 0 : i32
    %c0_i32_0 = arith.constant 0 : i32
    %c0_i32_1 = arith.constant 0 : i32
    return %c0_i32, %c0_i32_0 : i32, i32
  }
  func.func @transform_3(%arg0: i32) -> (i32, i32) {
    %c0_i32 = arith.constant 0 : i32
    %c0_i32_0 = arith.constant 0 : i32
    %c0_i32_1 = arith.constant 0 : i32
    return %c0_i32, %c0_i32_0 : i32, i32
  }
  func.func @transform_4(%arg0: i32) -> (i32, i32) {
    %c0_i32 = arith.constant 0 : i32
    %c0_i32_0 = arith.constant 0 : i32
    %c0_i32_1 = arith.constant 0 : i32
    return %c0_i32, %c0_i32_0 : i32, i32
  }
  func.func @transform_5(%arg0: i32) -> (i32, i32) {
    %c0_i32 = arith.constant 0 : i32
    %c0_i32_0 = arith.constant 0 : i32
    %c0_i32_1 = arith.constant 0 : i32
    return %c0_i32, %c0_i32_0 : i32, i32
  }
  func.func @transform_6(%arg0: i32) -> (i32, i32) {
    %c0_i32 = arith.constant 0 : i32
    %c0_i32_0 = arith.constant 0 : i32
    %c0_i32_1 = arith.constant 0 : i32
    return %c0_i32, %c0_i32_0 : i32, i32
  }
  func.func @transform_7(%arg0: i32) -> (i32, i32) {
    %c0_i32 = arith.constant 0 : i32
    %c0_i32_0 = arith.constant 0 : i32
    %c0_i32_1 = arith.constant 0 : i32
    return %c0_i32, %c0_i32_0 : i32, i32
  }
  func.func @transform_8(%arg0: i32) -> (i32, i32) {
    %c0_i32 = arith.constant 0 : i32
    %c0_i32_0 = arith.constant 0 : i32
    %c0_i32_1 = arith.constant 0 : i32
    return %c0_i32, %c0_i32_0 : i32, i32
  }
  func.func @transform_9(%arg0: i32) -> (i32, i32) {
    %c0_i32 = arith.constant 0 : i32
    %c0_i32_0 = arith.constant 0 : i32
    return %arg0, %c0_i32 : i32, i32
  }
}

</mosaic_0001>

<bundles_post_ra>
// kernel: tpu_custom_call.1
= control target key start
LH: loop header
LB: loop body
LE: loop exit
PB: predicated region body
PF: predicated region fallthrough
CT: control target
= control target key end

     0   :  { %s770_s0 = inlined_call_operand.vmem [shape: f32[2,64], index: 0, kind: input, shape index: {}]   ;;  %s771_s1 = inlined_call_operand.hbm [shape: f32[64,256], index: 1, kind: input, shape index: {}]   ;;  %s772_s2 = inlined_call_operand.vmem [shape: f32[1,256], index: 2, kind: input, shape index: {}]   ;;  %s773_s3 = inlined_call_operand.hbm [shape: f32[128,128], index: 3, kind: input, shape index: {}]   ;;  %s774_s4 = inlined_call_operand.vmem [shape: f32[1,128], index: 4, kind: input, shape index: {}]   ;;  %s775_s5 = inlined_call_operand.hbm [shape: f32[128,128], index: 5, kind: input, shape index: {}]   ;;  %s776_s6 = inlined_call_operand.vmem [shape: f32[1,128], index: 6, kind: input, shape index: {}]   ;;  %s777_s7 = inlined_call_operand.vmem [shape: f32[1,128], index: 7, kind: input, shape index: {}]   ;;  %s778_s8 = inlined_call_operand.<no memory space> [shape: f32[1,1], index: 8, kind: input, shape index: {}]   ;;  %s779_s9 = inlined_call_operand.hbm [shape: f32[2,128], index: 9, kind: output, shape index: {}]  }
   0x1   :  { %v14_v0 = vstv %s778_s8 }
   0x2   :  { %15 = vst [vmem:[#allocation2] sm:$0x1] %v14_v0 }
   0x3   :  { %16 = vsyncpa [#allocation4], 0 }
   0x4   :  { %17 = vsyncpa [#allocation7], 0 }
   0x5   :  { %18 = vsyncpa [#allocation5], 0  ;;  %s641_s11 = smov [#allocation6]  }
   0x6   :  { %s40_s12 = sshll.u32 %s641_s11, 4  ;;  %s41_s12 = int_to_ptr.vmem [resolvable:$true] %s40_s12 }
   0x7   :  { %s563_s13 = scalar_lea.vmem %s41_s12, 2048  ;;  %p568_p1 = scmp.lt.s32.totalorder %s41_s12, %s41_s12 }
   0x8   :  { %p564_p0 = scmp.ne.s32.totalorder %s41_s12, %s563_s13  ;;  %p569_p2 = scmp.lt.s32.totalorder %s563_s13, %s563_s13 }
   0xa   :  { %p570_p3 = por %p569_p2, %p568_p1 }
   0xc   :  { %p571_p4 = pnand %p570_p3, %p564_p0 }
   0xe   :  { %574 = shalt.err (!%p571_p4)
}
   0xf   :  { %s642_s14 = smov 128   ;;  %s643_s15 = smov 8  }
  0x10   :  { %46 = dma.hbm_to_vmem [thread:$0]  %s773_s3, 2048, %s41_s12, [#allocation7], %s642_s14, %s642_s14, %s643_s15  }
  0x11   :  { %s644_s8 = smov [#allocation3]  }
  0x12   :  { %s26_s18 = sshll.u32 %s644_s8, 4  ;;  %s27_s18 = int_to_ptr.vmem [resolvable:$true] %s26_s18 }
  0x13   :  { %s583_s19 = scalar_lea.vmem %s27_s18, 2048  ;;  %p588_p6 = scmp.lt.s32.totalorder %s27_s18, %s27_s18 }
  0x14   :  { %p584_p5 = scmp.ne.s32.totalorder %s27_s18, %s583_s19  ;;  %p589_p7 = scmp.lt.s32.totalorder %s583_s19, %s583_s19 }
  0x16   :  { %p590_p8 = por %p589_p7, %p588_p6 }
  0x18   :  { %p591_p9 = pnand %p590_p8, %p584_p5 }
  0x1a   :  { %594 = shalt.err (!%p591_p9)
}
  0x1b   :  { %s645_s20 = smov 256   ;;  %s646_s21 = smov 16  }
  0x1c   :  { %32 = dma.hbm_to_vmem [thread:$0]  %s771_s1, 2048, %s27_s18, [#allocation4], %s645_s20, %s645_s20, %s646_s21  }
  0x1d   :  { %s647_s24 = smov [#allocation8]  }
  0x1e   :  { %s54_s25 = sshll.u32 %s647_s24, 4  ;;  %s55_s25 = int_to_ptr.vmem [resolvable:$true] %s54_s25 }
  0x1f   :  { %s603_s3 = scalar_lea.vmem %s55_s25, 2048  ;;  %p608_p11 = scmp.lt.s32.totalorder %s55_s25, %s55_s25 }
  0x20   :  { %p604_p10 = scmp.ne.s32.totalorder %s55_s25, %s603_s3  ;;  %p609_p12 = scmp.lt.s32.totalorder %s603_s3, %s603_s3 }
  0x22   :  { %p610_p13 = por %p609_p12, %p608_p11 }
  0x24   :  { %p611_p0 = pnand %p610_p13, %p604_p10 }
  0x26   :  { %614 = shalt.err (!%p611_p0)
}
  0x27   :  { %60 = dma.hbm_to_vmem [thread:$0]  %s775_s5, 2048, %s55_s25, [#allocation7], %s642_s14, %s642_s14, %s643_s15  }
  0x28   :  { %635 = dma.done.wait [#allocation4], 2048  }
  0x29   :  { %636 = vsyncadd [#allocation4], 4294965248 }
  0x2a   :  { %637 = dma.done.wait [#allocation7], 4096  }
  0x2b   :  { %638 = vsyncadd [#allocation7], 4294963200  ;;  %v648_v1 = vmov 0.0   ;;  %v92_v2 = vld [vmem:[#allocation3 + $0x78] sm:$0xff]  ;;  %v91_v3 = vld [vmem:[#allocation3 + $0x70] sm:$0xff]  ;;  %vm105_vm0 = vcmask 523264   ;;  %v95_v48 = vlaneseq }
  0x2c   :  { %173 = vmatprep.mubr.f32.mxu0 %v648_v1  ;;  %466 = vmatprep.subr.mxu1 %v648_v1  ;;  %v90_v4 = vld [vmem:[#allocation3 + $0x68] sm:$0xff]  ;;  %v89_v5 = vld [vmem:[#allocation3 + $0x60] sm:$0xff]  ;;  %v88_v6 = vld [vmem:[#allocation3 + $0x58] sm:$0xff]  ;;  %vm649_vm1 = vmmov 0   ;;  %vm369_vm2 = vcmask 1041408  }
  0x2d   :  { %125 = vmatprep.subr.mxu0 %v92_v2  ;;  %v87_v7 = vld [vmem:[#allocation3 + $0x50] sm:$0xff]  ;;  %v86_v8 = vld [vmem:[#allocation3 + $0x48] sm:$0xff]  ;;  %v85_v9 = vld [vmem:[#allocation3 + $0x40] sm:$0xff]  ;;  %498 = vmatprep.mubr.msk.f32.mxu1 %vm649_vm1, %v648_v1  ;;  %v96_v49 = vshrl.u32 %v95_v48, 7 }
  0x2e   :  { %126 = vmatpush1.msra.mxu0 %v91_v3  ;;  %v197_v10 = vld [vmem:[#allocation6 + $0x78] sm:$0xff]  ;;  %v196_v12 = vld [vmem:[#allocation6 + $0x70] sm:$0xff]  ;;  %v195_v14 = vld [vmem:[#allocation6 + $0x68] sm:$0xff] }
  0x2f   :  { %127 = vmatprep.subr.mxu0 %v90_v4  ;;  %v84_v11 = vld [vmem:[#allocation3 + $0x38] sm:$0xff]  ;;  %467 = vmatpush3.msra.mxu1 %v197_v10  ;;  %v83_v13 = vld [vmem:[#allocation3 + $0x30] sm:$0xff]  ;;  %v82_v15 = vld [vmem:[#allocation3 + $0x28] sm:$0xff]  ;;  %v97_v50 = vsub.s32 0, %v96_v49  ;;  %v101_v0 = vsub.s32 1, %v96_v49 }
  0x30   :  { %128 = vmatpush1.msra.mxu0 %v89_v5  ;;  %468 = vmatprep.subr.mxu1 %v648_v1  ;;  %v81_v16 = vld [vmem:[#allocation3 + $0x20] sm:$0xff]  ;;  %v80_v18 = vld [vmem:[#allocation3 + $0x18] sm:$0xff]  ;;  %v79_v19 = vld [vmem:[#allocation3 + $0x10] sm:$0xff] }
  0x31   :  { %129 = vmatprep.subr.mxu0 %v88_v6  ;;  %469 = vmatpush3.msra.mxu1 %v196_v12  ;;  %v194_v17 = vld [vmem:[#allocation6 + $0x60] sm:$0xff]  ;;  %v193_v20 = vld [vmem:[#allocation6 + $0x58] sm:$0xff]  ;;  %v78_v21 = vld [vmem:[#allocation3 + $0x8] sm:$0xff] }
  0x32   :  { %130 = vmatpush1.msra.mxu0 %v87_v7  ;;  %470 = vmatprep.subr.mxu1 %v648_v1  ;;  %v77_v22 = vld [vmem:[#allocation3] sm:$0xff]  ;;  %v192_v23 = vld [vmem:[#allocation6 + $0x50] sm:$0xff]  ;;  %v191_v25 = vld [vmem:[#allocation6 + $0x48] sm:$0xff] }
  0x33   :  { %131 = vmatprep.subr.mxu0 %v86_v8  ;;  %471 = vmatpush3.msra.mxu1 %v195_v14  ;;  %v76_v24 = vld [vmem:[%s770_s0] sm:$0x3]  ;;  %v188_v28 = vld [vmem:[#allocation6 + $0x30] sm:$0xff]  ;;  %v187_v29 = vld [vmem:[#allocation6 + $0x28] sm:$0xff] }
  0x34   :  { %132 = vmatpush1.msra.mxu0 %v85_v9  ;;  %472 = vmatprep.subr.mxu1 %v648_v1  ;;  %v190_v26 = vld [vmem:[#allocation6 + $0x40] sm:$0xff]  ;;  %v189_v27 = vld [vmem:[#allocation6 + $0x38] sm:$0xff]  ;;  %v184_v32 = vld [vmem:[#allocation6 + $0x10] sm:$0xff] }
  0x35   :  { %133 = vmatprep.subr.mxu0 %v84_v11  ;;  %473 = vmatpush3.msra.mxu1 %v194_v17  ;;  %v186_v30 = vld [vmem:[#allocation6 + $0x20] sm:$0xff]  ;;  %v185_v31 = vld [vmem:[#allocation6 + $0x18] sm:$0xff]  ;;  %v183_v33 = vld [vmem:[#allocation6 + $0x8] sm:$0xff] }
  0x36   :  { %134 = vmatpush1.msra.mxu0 %v83_v13  ;;  %474 = vmatprep.subr.mxu1 %v648_v1  ;;  %v182_v34 = vld [vmem:[#allocation6] sm:$0xff]  ;;  %v291_v35 = vld [vmem:[#allocation8 + $0x78] sm:$0xff]  ;;  %v290_v36 = vld [vmem:[#allocation8 + $0x70] sm:$0xff]  ;;  %v650_v13 = vmov 0  }
  0x37   :  { %135 = vmatprep.subr.mxu0 %v82_v15  ;;  %475 = vmatpush3.msra.mxu1 %v193_v20  ;;  %v289_v37 = vld [vmem:[#allocation8 + $0x68] sm:$0xff]  ;;  %v288_v38 = vld [vmem:[#allocation8 + $0x60] sm:$0xff]  ;;  %v287_v39 = vld [vmem:[#allocation8 + $0x58] sm:$0xff] }
  0x38   :  { %136 = vmatpush1.msra.mxu0 %v81_v16  ;;  %476 = vmatprep.subr.mxu1 %v648_v1  ;;  %v286_v40 = vld [vmem:[#allocation8 + $0x50] sm:$0xff]  ;;  %v285_v41 = vld [vmem:[#allocation8 + $0x48] sm:$0xff]  ;;  %v284_v42 = vld [vmem:[#allocation8 + $0x40] sm:$0xff] }
  0x39   :  { %137 = vmatprep.subr.mxu0 %v80_v18  ;;  %477 = vmatpush3.msra.mxu1 %v192_v23  ;;  %v283_v43 = vld [vmem:[#allocation8 + $0x38] sm:$0xff]  ;;  %v282_v44 = vld [vmem:[#allocation8 + $0x30] sm:$0xff]  ;;  %v281_v45 = vld [vmem:[#allocation8 + $0x28] sm:$0xff] }
  0x3a   :  { %138 = vmatpush1.msra.mxu0 %v79_v19  ;;  %478 = vmatprep.subr.mxu1 %v648_v1  ;;  %v280_v46 = vld [vmem:[#allocation8 + $0x20] sm:$0xff]  ;;  %v279_v47 = vld [vmem:[#allocation8 + $0x18] sm:$0xff]  ;;  %v278_v56 = vld [vmem:[#allocation8 + $0x10] sm:$0xff] }
  0x3b   :  { %139 = vmatprep.subr.mxu0 %v78_v21  ;;  %479 = vmatpush3.msra.mxu1 %v191_v25  ;;  %v93_v51 = vld [vmem:[%s772_s2] sm:$0x3]  ;;  %v277_v57 = vld [vmem:[#allocation8 + $0x8] sm:$0xff] }
  0x3c   :  { %140 = vmatpush1.msra.mxu0 %v77_v22  ;;  %480 = vmatprep.subr.mxu1 %v648_v1  ;;  %v98_v52 = vrot.slane %v93_v51, %v97_v50  ;;  %v276_v58 = vld [vmem:[#allocation8] sm:$0xff]  ;;  %v428_v59 = vld [vmem:[%s774_s4] ss:$0 sm:$0xff]  ;;  %v102_v2 = vrot.slane %v93_v51, %v101_v0  ;;  %s651_s4 = smov [#allocation9]  }
  0x3d   :  { %427 = vmatmul.mubr.msk.f32.vlgmr.msra.gmra.mxu0 %vm105_vm0, %v76_v24  ;;  %501 = vmatprep.subr.mxu0 %v648_v1  ;;  %v429_v5 = vld [vmem:[%s776_s6] ss:$0 sm:$0xff]  ;;  %v402_v24 = vand.u32 127, %v95_v48  ;;  %s417_s6 = sshll.u32 %s651_s4, 4  ;;  %s418_s6 = int_to_ptr.vmem [resolvable:$true] %s417_s6 }
  0x3e   :  { %481 = vmatpush3.msra.mxu1 %v190_v26  ;;  %533 = vmatprep.mubr.msk.f32.mxu0 %vm649_vm1, %v648_v1  ;;  %v430_v7 = vld [vmem:[%s777_s7] ss:$0 sm:$0xff]  ;;  %s615_s7 = scalar_lea.vmem %s418_s6, 32  ;;  %p620_p2 = scmp.lt.s32.totalorder %s418_s6, %s418_s6 }
  0x3f   :  { %482 = vmatprep.subr.mxu1 %v648_v1  ;;  %502 = vmatpush3.msra.mxu0 %v291_v35  ;;  %v431_v17 = vld [vmem:[#allocation2] ss:$0 sm:$0xff]  ;;  %vm403_vm3 = vcmp.eq.s32.totalorder %v402_v24, 127  ;;  %p616_p1 = scmp.ne.s32.totalorder %s418_s6, %s615_s7  ;;  %p621_p3 = scmp.lt.s32.totalorder %s615_s7, %s615_s7 }
  0x40   :  { %483 = vmatpush3.msra.mxu1 %v189_v27  ;;  %503 = vmatprep.subr.mxu0 %v648_v1 }
  0x41   :  { %484 = vmatprep.subr.mxu1 %v648_v1  ;;  %504 = vmatpush3.msra.mxu0 %v290_v36  ;;  %p622_p4 = por %p621_p3, %p620_p2 }
  0x42   :  { %485 = vmatpush3.msra.mxu1 %v188_v28  ;;  %505 = vmatprep.subr.mxu0 %v648_v1 }
  0x43   :  { %486 = vmatprep.subr.mxu1 %v648_v1  ;;  %506 = vmatpush3.msra.mxu0 %v289_v37  ;;  %p623_p5 = pnand %p622_p4, %p616_p1 }
  0x44   :  { %487 = vmatpush3.msra.mxu1 %v187_v29  ;;  %507 = vmatprep.subr.mxu0 %v648_v1 }
  0x45   :  { %488 = vmatprep.subr.mxu1 %v648_v1  ;;  %508 = vmatpush3.msra.mxu0 %v288_v38 }
  0x46   :  { %489 = vmatpush3.msra.mxu1 %v186_v30  ;;  %509 = vmatprep.subr.mxu0 %v648_v1 }
  0x47   :  { %490 = vmatprep.subr.mxu1 %v648_v1  ;;  %510 = vmatpush3.msra.mxu0 %v287_v39 }
  0x48   :  { %491 = vmatpush3.msra.mxu1 %v185_v31  ;;  %511 = vmatprep.subr.mxu0 %v648_v1 }
  0x49   :  { %492 = vmatprep.subr.mxu1 %v648_v1  ;;  %512 = vmatpush3.msra.mxu0 %v286_v40 }
  0x4a   :  { %493 = vmatpush3.msra.mxu1 %v184_v32  ;;  %513 = vmatprep.subr.mxu0 %v648_v1 }
  0x4b   :  { %494 = vmatprep.subr.mxu1 %v648_v1  ;;  %514 = vmatpush3.msra.mxu0 %v285_v41 }
  0x4c   :  { %495 = vmatpush3.msra.mxu1 %v183_v33  ;;  %515 = vmatprep.subr.mxu0 %v648_v1 }
  0x4d   :  { %496 = vmatprep.subr.mxu1 %v648_v1  ;;  %516 = vmatpush3.msra.mxu0 %v284_v42 }
  0x4e   :  { %497 = vmatpush3.msra.mxu1 %v182_v34  ;;  %517 = vmatprep.subr.mxu0 %v648_v1 }
  0x4f   :  { %518 = vmatpush3.msra.mxu0 %v283_v43  ;;  %547 = vset.pattern.permute.xlu1 %v650_v13 }
  0x50   :  { %519 = vmatprep.subr.mxu0 %v648_v1  ;;  %548 = vset.pattern.permute.xlu0 %v650_v13 }
  0x51   :  { %520 = vmatpush3.msra.mxu0 %v282_v44 }
  0x52   :  { %521 = vmatprep.subr.mxu0 %v648_v1 }
  0x53   :  { %522 = vmatpush3.msra.mxu0 %v281_v45 }
  0x54   :  { %523 = vmatprep.subr.mxu0 %v648_v1 }
  0x55   :  { %524 = vmatpush3.msra.mxu0 %v280_v46 }
  0x56   :  { %525 = vmatprep.subr.mxu0 %v648_v1 }
  0x57   :  { %526 = vmatpush3.msra.mxu0 %v279_v47 }
  0x58   :  { %527 = vmatprep.subr.mxu0 %v648_v1 }
  0x59   :  { %528 = vmatpush3.msra.mxu0 %v278_v56 }
  0x5a   :  { %529 = vmatprep.subr.mxu0 %v648_v1 }
  0x5b   :  { %530 = vmatpush3.msra.mxu0 %v277_v57 }
  0x5c   :  { %531 = vmatprep.subr.mxu0 %v648_v1 }
  0x5d   :  { %532 = vmatpush3.msra.mxu0 %v276_v58 }
  0xfd   :  { %v175_v53 = vpop.f32.mrf.mxu0 }
  0xfe   :  { %v176_v54 = vadd.f32 %v175_v53, %v98_v52 }
  0xff   :  { %v177_v3 = vpop.f32.mrf.mxu0 }
 0x100   :  { %v180_v55 = vmax.f32 %v176_v54, 0.0  ;;  %v178_v4 = vadd.f32 %v177_v3, %v102_v2 }
 0x102   :  { %499 = vmatmul.mubr.f32.vlgmr.msra.gmra.mxu1 %v180_v55  ;;  %v181_v1 = vmax.f32 %v178_v4, 0.0 }
 0x104   :  { %v388_v11 = vmul.f32 %v430_v7, %v181_v1 }
 0x106   :  { %v389_v12 = vsel %vm369_vm2, %v388_v11, 0.0 }
 0x1c2   :  { %v271_v60 = vpop.f32.mrf.mxu1 }
 0x1c3   :  { %v272_v61 = vadd.f32 %v428_v59, %v271_v60 }
 0x1c4   :  { %v500_v62 = vpop.f32.mrf.mxu1 }
 0x1c5   :  { %v275_v63 = vmax.f32 %v272_v61, 0.0 }
 0x1c7   :  { %534 = vmatmul.mubr.f32.vlgmr.msra.gmra.mxu0 %v275_v63 }
 0x287   :  { %v365_v6 = vpop.f32.mrf.mxu0 }
 0x288   :  { %v366_v8 = vadd.f32 %v429_v5, %v365_v6 }
 0x289   :  { %v535_v9 = vpop.f32.mrf.mxu0 }
 0x28a   :  { %v370_v10 = vsel %vm369_vm2, %v366_v8, -inf }
 0x28b   :  { %371 = vmax.xlane.f32.xlu0 %v370_v10 }
 0x28f   :  { %390 = vadd.xlane.f32.xlu0 %v389_v12 }
 0x314   :  { %v372_v14 = vpop.xlane.xlu0 %371 }
 0x315   :  { %v373_v15 = vsub.f32 %v366_v8, %v372_v14 }
 0x317   :  { %v374_v16 = vmul.f32 1.442695, %v373_v15 }
 0x318   :  { %v391_v18 = vpop.xlane.xlu0 %390 }
 0x319   :  { %549 = vpow2.f32 %v374_v16  ;;  %v399_v20 = vadd.f32 %v431_v17, %v391_v18 }
 0x31b   :  { %551 = vtanh.f32 %v399_v20 }
 0x326   :  { %v550_v19 = vpop.eup %549 }
 0x327   :  { %v376_v21 = vsel %vm369_vm2, %v550_v19, 0.0 }
 0x328   :  { %377 = vadd.xlane.f32.xlu1 %v376_v21  ;;  %v552_v22 = vpop.eup %551 }
 0x339   :  { %406 = vperm.xlu1 %547, %v552_v22  }
 0x3b1   :  { %v378_v23 = vpop.xlane.xlu1 %377 }
 0x3b2   :  { %553 = vrcp.f32 %v378_v23 }
 0x3b5   :  { %v407_v27 = vpop.permute.xlu1 %406 }
 0x3bf   :  { %v554_v25 = vpop.eup %553 }
 0x3c0   :  { %v380_v26 = vmul.f32 %v554_v25, %v550_v19 }
 0x3c2   :  { %v409_v28 = vsel %vm403_vm3, %v407_v27, %v380_v26 }
 0x3c3   :  { %410 = vst [vmem:[#allocation9] sm:$0x3] %v409_v28 }
 0x3c4   :  { %626 = shalt.err (!%p623_p5)
}
 0x3c5   :  { %420 = dma.vmem_to_hbm [thread:$0]  %s418_s6, 32, %s779_s9, [#allocation5]  }
 0x3c6   :  { %639 = dma.done.wait [#allocation5], 32  }
 0x3c7   :  { %640 = vsyncadd [#allocation5], 4294967264 }
 0x3c8   :  { %424 = vsyncpa [#allocation4], 1 }
 0x3c9   :  { %425 = vsyncpa [#allocation7], 1 }
 0x3ca   :  { %426 = vsyncpa [#allocation5], 1 }

</bundles_post_ra>
